<compile_context>
chip_gen: v6e
topology: v6e:2x2x1
jax: 0.10.0
libtpu: 0.0.40
codegen_flags: <defaults>
</compile_context>

<pallas_src>
import functools

import jax
import jax.numpy as jnp
from jax.experimental import pallas as pl
from jax.experimental.pallas import tpu as pltpu


def _attention_stream(x_ref, w_ref, out_ref, *, compute_dtype):
    """One attention stream (head or body); whole batch lives in VMEM.

    x_ref  : (B, T, C)  activations
    w_ref  : (3, C, H)  fused [Wk, Wq, Wv]  (leading axis -> free ref indexing)
    out_ref: (B, T, H)
    """
    B, T, C = x_ref.shape
    H = w_ref.shape[-1]

    # All batch rows in one MXU pass per projection.  Operands cast to
    # `compute_dtype` (bf16 default), f32 accumulation via preferred_element_type.
    x2d = x_ref[...].reshape(B * T, C).astype(compute_dtype)            # (B*T, C)
    k = jnp.dot(x2d, w_ref[0].astype(compute_dtype),
                preferred_element_type=jnp.float32).reshape(B, T, H)
    q = jnp.dot(x2d, w_ref[1].astype(compute_dtype),
                preferred_element_type=jnp.float32).reshape(B, T, H)
    v = jnp.dot(x2d, w_ref[2].astype(compute_dtype),
                preferred_element_type=jnp.float32).reshape(B, T, H)

    # Fold 1/sqrt(H) into q (B*T*H elements) instead of the (B,T,T) score matrix.
    q = q * (float(H) ** -0.5)

    # scores = q @ k^T, batched over B; contraction on the last axes so no
    # transpose of k is materialized.
    scores = jnp.einsum("bqh,bkh->bqk",
                        q.astype(compute_dtype), k.astype(compute_dtype),
                        preferred_element_type=jnp.float32)             # (B,T,T) f32

    # Softmax over keys; statistics in f32, divide on the EUP (approx reciprocal).
    m = jnp.max(scores, axis=-1, keepdims=True)
    p = jnp.exp(scores - m)
    denom = jnp.sum(p, axis=-1, keepdims=True)
    aff = p * pl.reciprocal(denom, approx=True)

    # TODO(synk): training-mode dropout on `aff` (pltpu.prng_seed / prng_random_bits
    # + mask) not implemented; eval-mode dropout is the identity.

    out = jnp.einsum("bqk,bkh->bqh",
                     aff.astype(compute_dtype), v.astype(compute_dtype),
                     preferred_element_type=jnp.float32)                # (B,T,H) f32
    out_ref[...] = out.astype(out_ref.dtype)

    # TODO(synk): lane-dense output packing ((B,T,H)->(B,T*H), T*H=128 lanes) needs an
    # in-kernel sublane->lane relayout of the tiled dims; at this size the output is
    # ~2 KiB so the masked stores are hidden under launch/DMA overhead. Revisit it
    # together with the flash-style tiling below.


def _sa_head_kernel(xh_ref, xb_ref, wh_ref, wb_ref, oh_ref, ob_ref, *,
                    compute_dtype):
    # Both independent streams in ONE invocation (no grid / no per-step overhead).
    _attention_stream(xh_ref, wh_ref, oh_ref, compute_dtype=compute_dtype)
    _attention_stream(xb_ref, wb_ref, ob_ref, compute_dtype=compute_dtype)

    # TODO(synk): for large T (>=1k), switch to a flash-style (q_tile, kv_tile) grid
    # with online softmax instead of materializing (B,T,T) scores; derive tile sizes
    # per generation (v7x: 64 MiB VMEM ~= half the score tile of v5e/v6e) and set
    # pltpu.CompilerParams(vmem_limit_bytes=...) explicitly; on v7x also reintroduce
    # a 2-way "parallel" stream axis to feed both TensorCores.


def sa_head_forward(x_head, x_body, params, *, compute_dtype=jnp.bfloat16):
    """Forward pass of SA_Head (eval mode): single grid-less pallas_call.

    x_head, x_body   : (B, T, C)
    params["w_head"] : (3, C, H)  fused [Wk, Wq, Wv] for the head stream
    params["w_body"] : (3, C, H)  fused [Wk, Wq, Wv] for the body stream
    Returns (out_head, out_body), each (B, T, H).
    """
    B, T, C = x_head.shape
    w_head = params["w_head"]
    w_body = params["w_body"]
    H = w_head.shape[-1]

    itemsize = jnp.dtype(x_head.dtype).itemsize
    flops_per_stream = 2 * B * T * C * (3 * H) + 2 * (2 * B * T * T * H)
    cost = pl.CostEstimate(
        flops=2 * flops_per_stream,
        transcendentals=2 * (B * T * T + B * T),        # exp + approx reciprocal
        bytes_accessed=(x_head.size + x_body.size + w_head.size + w_body.size
                        + 2 * B * T * H) * itemsize,
    )

    kernel = functools.partial(_sa_head_kernel, compute_dtype=compute_dtype)

    def vmem():
        return pl.BlockSpec(memory_space=pltpu.MemorySpace.VMEM)

    out_head, out_body = pl.pallas_call(
        kernel,
        out_shape=(jax.ShapeDtypeStruct((B, T, H), x_head.dtype),
                   jax.ShapeDtypeStruct((B, T, H), x_body.dtype)),
        in_specs=[vmem(), vmem(), vmem(), vmem()],
        out_specs=(vmem(), vmem()),
        cost_estimate=cost,
    )(x_head, x_body, w_head, w_body)
    return out_head, out_body


def init_params(key, n_embd, head_size, dtype=jnp.float32):
    """Deterministic init; weights fused ONCE here as (3, n_embd, head_size)
    stacks [Wk, Wq, Wv] (PyTorch weight.T), so the forward path does zero
    per-call concat/stack work."""
    keys = jax.random.split(key, 6)
    scale = 1.0 / (n_embd ** 0.5)
    ws = [jax.random.normal(k, (n_embd, head_size), dtype) * scale for k in keys]
    return {
        "w_head": jnp.stack(ws[0:3], axis=0),
        "w_body": jnp.stack(ws[3:6], axis=0),
    }


def _reference(x, w):
    """Plain-JAX reference (matches the PyTorch module, eval mode). w: (3,C,H)."""
    k = x @ w[0]
    q = x @ w[1]
    v = x @ w[2]
    scores = (q @ jnp.swapaxes(k, -2, -1)) * (k.shape[-1] ** -0.5)
    aff = jax.nn.softmax(scores, axis=-1)
    return aff @ v


if __name__ == "__main__":
    B, T, C, H = 2, 8, 32, 16   # batch, seq, n_embd, head_size

    key = jax.random.PRNGKey(0)
    k_params, k_xh, k_xb = jax.random.split(key, 3)

    params = init_params(k_params, n_embd=C, head_size=H)
    x_head = jax.random.normal(k_xh, (B, T, C), jnp.float32)
    x_body = jax.random.normal(k_xb, (B, T, C), jnp.float32)

    ref_head = _reference(x_head, params["w_head"])
    ref_body = _reference(x_body, params["w_body"])

    # Default path: bf16 MXU operands, f32 accumulation / softmax stats.
    out_head, out_body = sa_head_forward(x_head, x_body, params)
    jax.block_until_ready((out_head, out_body))
    assert out_head.shape == (B, T, H) and out_body.shape == (B, T, H)
    assert jnp.allclose(out_head, ref_head, atol=1e-1, rtol=1e-1)
    assert jnp.allclose(out_body, ref_body, atol=1e-1, rtol=1e-1)

    # f32 MXU path: tight check against the pure-JAX reference.
    out_head32, out_body32 = sa_head_forward(
        x_head, x_body, params, compute_dtype=jnp.float32)
    jax.block_until_ready((out_head32, out_body32))
    assert jnp.allclose(out_head32, ref_head, atol=2e-3, rtol=2e-3)
    assert jnp.allclose(out_body32, ref_body, atol=2e-3, rtol=2e-3)

    print("KERNEL_OK")
</pallas_src>

<mosaic_0001>
module attributes {stable_mosaic.version = 11 : i64} {
  func.func @_sa_head_kernel(%arg0: memref<2x8x32xf32, #tpu.memory_space<vmem>>, %arg1: memref<2x8x32xf32, #tpu.memory_space<vmem>>, %arg2: memref<3x32x16xf32, #tpu.memory_space<vmem>>, %arg3: memref<3x32x16xf32, #tpu.memory_space<vmem>>, %arg4: memref<2x8x16xf32, #tpu.memory_space<vmem>>, %arg5: memref<2x8x16xf32, #tpu.memory_space<vmem>>) attributes {dimension_semantics = [], scalar_prefetch = 0 : i64, scratch_operands = 0 : i64, tpu.core_type = #tpu.core_type<tc>} {
    %c0 = arith.constant 0 : index
    %c0_0 = arith.constant 0 : index
    %c0_1 = arith.constant 0 : index
    %0 = vector.load %arg0[%c0, %c0_0, %c0_1] : memref<2x8x32xf32, #tpu.memory_space<vmem>>, vector<2x8x32xf32>
    %1 = vector.shape_cast %0 : vector<2x8x32xf32> to vector<16x32xf32>
    %2 = arith.truncf %1 : vector<16x32xf32> to vector<16x32xbf16>
    %c0_2 = arith.constant 0 : index
    %c0_3 = arith.constant 0 : index
    %c0_4 = arith.constant 0 : index
    %3 = vector.load %arg2[%c0_2, %c0_3, %c0_4] : memref<3x32x16xf32, #tpu.memory_space<vmem>>, vector<1x32x16xf32>
    %4 = vector.shape_cast %3 : vector<1x32x16xf32> to vector<32x16xf32>
    %5 = arith.truncf %4 : vector<32x16xf32> to vector<32x16xbf16>
    %cst = arith.constant dense<0.000000e+00> : vector<16x16xf32>
    %6 = tpu.matmul %2, %5, %cst {dimension_numbers = #tpu.dot_dimension_numbers<[1], [0], [0], [1], [0, 0, 1, 1], [], []>} : vector<16x32xbf16>, vector<32x16xbf16>, vector<16x16xf32> -> vector<16x16xf32>
    %7 = vector.shape_cast %6 : vector<16x16xf32> to vector<2x8x16xf32>
    %c1 = arith.constant 1 : index
    %c0_5 = arith.constant 0 : index
    %c0_6 = arith.constant 0 : index
    %8 = vector.load %arg2[%c1, %c0_5, %c0_6] : memref<3x32x16xf32, #tpu.memory_space<vmem>>, vector<1x32x16xf32>
    %9 = vector.shape_cast %8 : vector<1x32x16xf32> to vector<32x16xf32>
    %10 = arith.truncf %9 : vector<32x16xf32> to vector<32x16xbf16>
    %cst_7 = arith.constant dense<0.000000e+00> : vector<16x16xf32>
    %11 = tpu.matmul %2, %10, %cst_7 {dimension_numbers = #tpu.dot_dimension_numbers<[1], [0], [0], [1], [0, 0, 1, 1], [], []>} : vector<16x32xbf16>, vector<32x16xbf16>, vector<16x16xf32> -> vector<16x16xf32>
    %12 = vector.shape_cast %11 : vector<16x16xf32> to vector<2x8x16xf32>
    %c2 = arith.constant 2 : index
    %c0_8 = arith.constant 0 : index
    %c0_9 = arith.constant 0 : index
    %13 = vector.load %arg2[%c2, %c0_8, %c0_9] : memref<3x32x16xf32, #tpu.memory_space<vmem>>, vector<1x32x16xf32>
    %14 = vector.shape_cast %13 : vector<1x32x16xf32> to vector<32x16xf32>
    %15 = arith.truncf %14 : vector<32x16xf32> to vector<32x16xbf16>
    %cst_10 = arith.constant dense<0.000000e+00> : vector<16x16xf32>
    %16 = tpu.matmul %2, %15, %cst_10 {dimension_numbers = #tpu.dot_dimension_numbers<[1], [0], [0], [1], [0, 0, 1, 1], [], []>} : vector<16x32xbf16>, vector<32x16xbf16>, vector<16x16xf32> -> vector<16x16xf32>
    %17 = vector.shape_cast %16 : vector<16x16xf32> to vector<2x8x16xf32>
    %cst_11 = arith.constant 2.500000e-01 : f32
    %18 = vector.broadcast %cst_11 : f32 to vector<2x8x16xf32>
    %19 = arith.mulf %12, %18 : vector<2x8x16xf32>
    %20 = arith.truncf %19 : vector<2x8x16xf32> to vector<2x8x16xbf16>
    %21 = arith.truncf %7 : vector<2x8x16xf32> to vector<2x8x16xbf16>
    "tpu.trace_start"() <{level = 10 : i32, message = "bqh,bkh->bqk"}> : () -> ()
    %cst_12 = arith.constant dense<0.000000e+00> : vector<2x8x8xf32>
    %22 = tpu.matmul %20, %21, %cst_12 {dimension_numbers = #tpu.dot_dimension_numbers<[2], [2], [1], [1], [0, 0, 0, 1, 1, 1], [0], [0]>} : vector<2x8x16xbf16>, vector<2x8x16xbf16>, vector<2x8x8xf32> -> vector<2x8x8xf32>
    "tpu.trace_stop"() : () -> ()
    %cst_13 = arith.constant dense<0xFF800000> : vector<2x8xf32>
    %23 = vector.multi_reduction <maximumf>, %22, %cst_13 [2] : vector<2x8x8xf32> to vector<2x8xf32>
    %24 = vector.shape_cast %23 : vector<2x8xf32> to vector<2x8x1xf32>
    %25 = vector.broadcast %24 : vector<2x8x1xf32> to vector<2x8x8xf32>
    %26 = arith.subf %22, %25 : vector<2x8x8xf32>
    %27 = math.exp %26 : vector<2x8x8xf32>
    %cst_14 = arith.constant dense<0.000000e+00> : vector<2x8xf32>
    %28 = vector.multi_reduction <add>, %27, %cst_14 [2] : vector<2x8x8xf32> to vector<2x8xf32>
    %29 = vector.shape_cast %28 : vector<2x8xf32> to vector<2x8x1xf32>
    %30 = tpu.reciprocal %29 {approx = true} : vector<2x8x1xf32> -> vector<2x8x1xf32>
    %31 = vector.broadcast %30 : vector<2x8x1xf32> to vector<2x8x8xf32>
    %32 = arith.mulf %27, %31 : vector<2x8x8xf32>
    %33 = arith.truncf %32 : vector<2x8x8xf32> to vector<2x8x8xbf16>
    %34 = arith.truncf %17 : vector<2x8x16xf32> to vector<2x8x16xbf16>
    "tpu.trace_start"() <{level = 10 : i32, message = "bqk,bkh->bqh"}> : () -> ()
    %cst_15 = arith.constant dense<0.000000e+00> : vector<2x8x16xf32>
    %35 = tpu.matmul %33, %34, %cst_15 {dimension_numbers = #tpu.dot_dimension_numbers<[2], [1], [1], [2], [0, 0, 0, 1, 1, 2], [0], [0]>} : vector<2x8x8xbf16>, vector<2x8x16xbf16>, vector<2x8x16xf32> -> vector<2x8x16xf32>
    "tpu.trace_stop"() : () -> ()
    %c0_16 = arith.constant 0 : index
    %c0_17 = arith.constant 0 : index
    %c0_18 = arith.constant 0 : index
    %36 = vector.load %arg4[%c0_16, %c0_17, %c0_18] : memref<2x8x16xf32, #tpu.memory_space<vmem>>, vector<2x8x16xf32>
    tpu.vector_store %arg4[%c0_16, %c0_17, %c0_18], %35 {strides = array<i32>} : memref<2x8x16xf32, #tpu.memory_space<vmem>>, vector<2x8x16xf32>,
    %c0_19 = arith.constant 0 : index
    %c0_20 = arith.constant 0 : index
    %c0_21 = arith.constant 0 : index
    %37 = vector.load %arg1[%c0_19, %c0_20, %c0_21] : memref<2x8x32xf32, #tpu.memory_space<vmem>>, vector<2x8x32xf32>
    %38 = vector.shape_cast %37 : vector<2x8x32xf32> to vector<16x32xf32>
    %39 = arith.truncf %38 : vector<16x32xf32> to vector<16x32xbf16>
    %c0_22 = arith.constant 0 : index
    %c0_23 = arith.constant 0 : index
    %c0_24 = arith.constant 0 : index
    %40 = vector.load %arg3[%c0_22, %c0_23, %c0_24] : memref<3x32x16xf32, #tpu.memory_space<vmem>>, vector<1x32x16xf32>
    %41 = vector.shape_cast %40 : vector<1x32x16xf32> to vector<32x16xf32>
    %42 = arith.truncf %41 : vector<32x16xf32> to vector<32x16xbf16>
    %cst_25 = arith.constant dense<0.000000e+00> : vector<16x16xf32>
    %43 = tpu.matmul %39, %42, %cst_25 {dimension_numbers = #tpu.dot_dimension_numbers<[1], [0], [0], [1], [0, 0, 1, 1], [], []>} : vector<16x32xbf16>, vector<32x16xbf16>, vector<16x16xf32> -> vector<16x16xf32>
    %44 = vector.shape_cast %43 : vector<16x16xf32> to vector<2x8x16xf32>
    %c1_26 = arith.constant 1 : index
    %c0_27 = arith.constant 0 : index
    %c0_28 = arith.constant 0 : index
    %45 = vector.load %arg3[%c1_26, %c0_27, %c0_28] : memref<3x32x16xf32, #tpu.memory_space<vmem>>, vector<1x32x16xf32>
    %46 = vector.shape_cast %45 : vector<1x32x16xf32> to vector<32x16xf32>
    %47 = arith.truncf %46 : vector<32x16xf32> to vector<32x16xbf16>
    %cst_29 = arith.constant dense<0.000000e+00> : vector<16x16xf32>
    %48 = tpu.matmul %39, %47, %cst_29 {dimension_numbers = #tpu.dot_dimension_numbers<[1], [0], [0], [1], [0, 0, 1, 1], [], []>} : vector<16x32xbf16>, vector<32x16xbf16>, vector<16x16xf32> -> vector<16x16xf32>
    %49 = vector.shape_cast %48 : vector<16x16xf32> to vector<2x8x16xf32>
    %c2_30 = arith.constant 2 : index
    %c0_31 = arith.constant 0 : index
    %c0_32 = arith.constant 0 : index
    %50 = vector.load %arg3[%c2_30, %c0_31, %c0_32] : memref<3x32x16xf32, #tpu.memory_space<vmem>>, vector<1x32x16xf32>
    %51 = vector.shape_cast %50 : vector<1x32x16xf32> to vector<32x16xf32>
    %52 = arith.truncf %51 : vector<32x16xf32> to vector<32x16xbf16>
    %cst_33 = arith.constant dense<0.000000e+00> : vector<16x16xf32>
    %53 = tpu.matmul %39, %52, %cst_33 {dimension_numbers = #tpu.dot_dimension_numbers<[1], [0], [0], [1], [0, 0, 1, 1], [], []>} : vector<16x32xbf16>, vector<32x16xbf16>, vector<16x16xf32> -> vector<16x16xf32>
    %54 = vector.shape_cast %53 : vector<16x16xf32> to vector<2x8x16xf32>
    %cst_34 = arith.constant 2.500000e-01 : f32
    %55 = vector.broadcast %cst_34 : f32 to vector<2x8x16xf32>
    %56 = arith.mulf %49, %55 : vector<2x8x16xf32>
    %57 = arith.truncf %56 : vector<2x8x16xf32> to vector<2x8x16xbf16>
    %58 = arith.truncf %44 : vector<2x8x16xf32> to vector<2x8x16xbf16>
    "tpu.trace_start"() <{level = 10 : i32, message = "bqh,bkh->bqk"}> : () -> ()
    %cst_35 = arith.constant dense<0.000000e+00> : vector<2x8x8xf32>
    %59 = tpu.matmul %57, %58, %cst_35 {dimension_numbers = #tpu.dot_dimension_numbers<[2], [2], [1], [1], [0, 0, 0, 1, 1, 1], [0], [0]>} : vector<2x8x16xbf16>, vector<2x8x16xbf16>, vector<2x8x8xf32> -> vector<2x8x8xf32>
    "tpu.trace_stop"() : () -> ()
    %cst_36 = arith.constant dense<0xFF800000> : vector<2x8xf32>
    %60 = vector.multi_reduction <maximumf>, %59, %cst_36 [2] : vector<2x8x8xf32> to vector<2x8xf32>
    %61 = vector.shape_cast %60 : vector<2x8xf32> to vector<2x8x1xf32>
    %62 = vector.broadcast %61 : vector<2x8x1xf32> to vector<2x8x8xf32>
    %63 = arith.subf %59, %62 : vector<2x8x8xf32>
    %64 = math.exp %63 : vector<2x8x8xf32>
    %cst_37 = arith.constant dense<0.000000e+00> : vector<2x8xf32>
    %65 = vector.multi_reduction <add>, %64, %cst_37 [2] : vector<2x8x8xf32> to vector<2x8xf32>
    %66 = vector.shape_cast %65 : vector<2x8xf32> to vector<2x8x1xf32>
    %67 = tpu.reciprocal %66 {approx = true} : vector<2x8x1xf32> -> vector<2x8x1xf32>
    %68 = vector.broadcast %67 : vector<2x8x1xf32> to vector<2x8x8xf32>
    %69 = arith.mulf %64, %68 : vector<2x8x8xf32>
    %70 = arith.truncf %69 : vector<2x8x8xf32> to vector<2x8x8xbf16>
    %71 = arith.truncf %54 : vector<2x8x16xf32> to vector<2x8x16xbf16>
    "tpu.trace_start"() <{level = 10 : i32, message = "bqk,bkh->bqh"}> : () -> ()
    %cst_38 = arith.constant dense<0.000000e+00> : vector<2x8x16xf32>
    %72 = tpu.matmul %70, %71, %cst_38 {dimension_numbers = #tpu.dot_dimension_numbers<[2], [1], [1], [2], [0, 0, 0, 1, 1, 2], [0], [0]>} : vector<2x8x8xbf16>, vector<2x8x16xbf16>, vector<2x8x16xf32> -> vector<2x8x16xf32>
    "tpu.trace_stop"() : () -> ()
    %c0_39 = arith.constant 0 : index
    %c0_40 = arith.constant 0 : index
    %c0_41 = arith.constant 0 : index
    %73 = vector.load %arg5[%c0_39, %c0_40, %c0_41] : memref<2x8x16xf32, #tpu.memory_space<vmem>>, vector<2x8x16xf32>
    tpu.vector_store %arg5[%c0_39, %c0_40, %c0_41], %72 {strides = array<i32>} : memref<2x8x16xf32, #tpu.memory_space<vmem>>, vector<2x8x16xf32>,
    return
  }
}

</mosaic_0001>

<bundles_post_ra>
// kernel: tpu_custom_call.1
= control target key start
LH: loop header
LB: loop body
LE: loop exit
PB: predicated region body
PF: predicated region fallthrough
CT: control target
= control target key end

     0   :  { %11 = vsyncpa [#allocation3], 0  ;;  %v1018_v3 = vmov 0.0   ;;  %vm1019_vm0 = vmmov 0   ;;  %s1226_s0 = inlined_call_operand.vmem [shape: f32[2,8,32], index: 0, kind: input, shape index: {}]   ;;  %s1227_s1 = inlined_call_operand.vmem [shape: f32[2,8,32], index: 1, kind: input, shape index: {}]   ;;  %s1228_s2 = inlined_call_operand.vmem [shape: f32[3,32,16], index: 2, kind: input, shape index: {}]   ;;  %s1229_s3 = inlined_call_operand.vmem [shape: f32[3,32,16], index: 3, kind: input, shape index: {}]   ;;  %s1230_s4 = inlined_call_operand.hbm [shape: f32[2,8,16], index: 4, kind: output, shape index: {0}]   ;;  %s1231_s5 = inlined_call_operand.hbm [shape: f32[2,8,16], index: 5, kind: output, shape index: {1}]  }
   0x1   :  { %v27_v0 = vld [vmem:[%s1228_s2 + $0x10] sm:$0xff]  ;;  %v28_v1 = vld [vmem:[%s1228_s2 + $0x18] sm:$0xff]  ;;  %856 = vmatprep.subr.bf16.mxu0 %v1018_v3  ;;  %864 = vmatprep.subr.bf16.mxu1 %v1018_v3  ;;  %v25_v6 = vld [vmem:[%s1228_s2] sm:$0xff] }
   0x2   :  { %v795_v2 = vld [vmem:[%s1228_s2 + $0x30] sm:$0xff]  ;;  %v30_v4 = vpack.c.bf16 %v28_v1, %v27_v0  ;;  %v796_v5 = vld [vmem:[%s1228_s2 + $0x38] sm:$0xff]  ;;  %v26_v7 = vld [vmem:[%s1228_s2 + $0x8] sm:$0xff]  ;;  %860 = vmatprep.mubr.msk.bf16.mxu0 %vm1019_vm0, %v1018_v3  ;;  %868 = vmatprep.mubr.msk.bf16.mxu1 %vm1019_vm0, %v1018_v3 }
   0x3   :  { %v82_v8 = vpack.c.bf16 %v796_v5, %v795_v2  ;;  %v793_v9 = vld [vmem:[%s1228_s2 + $0x20] sm:$0xff]  ;;  %v794_v10 = vld [vmem:[%s1228_s2 + $0x28] sm:$0xff]  ;;  %v29_v11 = vpack.c.bf16 %v26_v7, %v25_v6  ;;  %v800_v15 = vld [vmem:[%s1228_s2 + $0x50] sm:$0xff] }
   0x4   :  { %857 = vmatpush3.bf16.msra.mxu0 %v30_v4  ;;  %v22_v12 = vld [vmem:[%s1226_s0] sm:$0xff]  ;;  %v23_v13 = vld [vmem:[%s1226_s0 + $0x8] sm:$0xff]  ;;  %v81_v14 = vpack.c.bf16 %v794_v10, %v793_v9  ;;  %v801_v16 = vld [vmem:[%s1228_s2 + $0x58] sm:$0xff] }
   0x5   :  { %865 = vmatpush3.bf16.msra.mxu1 %v82_v8  ;;  %858 = vmatprep.subr.bf16.mxu0 %v1018_v3 }
   0x6   :  { %12 = vsyncpa [#allocation5], 0  ;;  %866 = vmatprep.subr.bf16.mxu1 %v1018_v3  ;;  %v24_v17 = vpack.c.bf16 %v23_v13, %v22_v12  ;;  %vm31_vm1 = vcmask 261120   ;;  %v130_v18 = vpack.c.bf16 %v801_v16, %v800_v15  ;;  %v798_v19 = vld [vmem:[%s1228_s2 + $0x40] sm:$0xff]  ;;  %v799_v20 = vld [vmem:[%s1228_s2 + $0x48] sm:$0xff]  ;;  %vm178_vm2 = vcmask 130048  }
   0x7   :  { %v129_v21 = vpack.c.bf16 %v799_v20, %v798_v19  ;;  %vm301_vm3 = vcmask 1043456   ;;  %vm271_vm4 = vcmask 64512   ;;  %v398_v5 = vld [vmem:[%s1229_s3 + $0x10] sm:$0xff]  ;;  %v399_v6 = vld [vmem:[%s1229_s3 + $0x18] sm:$0xff]  ;;  %v396_v10 = vld [vmem:[%s1229_s3] sm:$0xff] }
   0x8   :  { %859 = vmatpush3.bf16.msra.mxu0 %v29_v11  ;;  %v401_v9 = vpack.c.bf16 %v399_v6, %v398_v5  ;;  %v397_v12 = vld [vmem:[%s1229_s3 + $0x8] sm:$0xff]  ;;  %v810_v13 = vld [vmem:[%s1229_s3 + $0x30] sm:$0xff]  ;;  %v393_v19 = vld [vmem:[%s1227_s1] sm:$0xff] }
   0x9   :  { %867 = vmatpush3.bf16.msra.mxu1 %v81_v14  ;;  %872 = vmatprep.subr.bf16.mxu0 %v1018_v3  ;;  %v811_v14 = vld [vmem:[%s1229_s3 + $0x38] sm:$0xff]  ;;  %v394_v20 = vld [vmem:[%s1227_s1 + $0x8] sm:$0xff] }
   0xa   :  { %880 = vmatprep.subr.bf16.mxu1 %v1018_v3 }
   0xb   :  { %861 = vmatmul.mubr.msk.bf16.vlgmr.msra.gmra.mxu0 %vm31_vm1, %v24_v17 }
   0xc   :  { %869 = vmatmul.mubr.msk.bf16.vlgmr.msra.gmra.mxu1 %vm31_vm1, %v24_v17  ;;  %873 = vmatpush3.bf16.msra.mxu0 %v130_v18  ;;  %v452_v18 = vpack.c.bf16 %v811_v14, %v810_v13 }
   0xd   :  { %874 = vmatprep.subr.bf16.mxu0 %v1018_v3  ;;  %876 = vmatprep.mubr.msk.bf16.mxu0 %vm1019_vm0, %v1018_v3 }
   0xe   :  { %882 = vmatprep.mubr.msk.bf16.mxu1 %vm1019_vm0, %v1018_v3 }
  0x10   :  { %875 = vmatpush3.bf16.msra.mxu0 %v129_v21 }
  0x11   :  { %886 = vmatprep.subr.bf16.mxu0 %v1018_v3 }
  0x13   :  { %877 = vmatmul.mubr.msk.bf16.vlgmr.msra.gmra.mxu0 %vm31_vm1, %v24_v17  ;;  %v400_v17 = vpack.c.bf16 %v397_v12, %v396_v10 }
  0x14   :  { %888 = vmatprep.mubr.msk.bf16.mxu0 %vm1019_vm0, %v1018_v3 }
  0xcb   :  { %v69_v22 = vpop.f32.mrf.mxu0 }
  0xcc   :  { %v176_v23 = vpack.c.bf16 %v69_v22, %v69_v22  ;;  %v117_v24 = vpop.f32.mrf.mxu1  ;;  %v808_v22 = vld [vmem:[%s1229_s3 + $0x20] sm:$0xff] }
  0xcd   :  { %v862_v25 = vpop.f32.mrf.mxu0  ;;  %v172_v27 = vmul.f32 0.25, %v117_v24  ;;  %v395_v24 = vpack.c.bf16 %v394_v20, %v393_v19 }
  0xce   :  { %v183_v26 = vsel %vm178_vm2, %v176_v23, 0  ;;  %v870_v28 = vpop.f32.mrf.mxu1  ;;  %v809_v23 = vld [vmem:[%s1229_s3 + $0x28] sm:$0xff] }
  0xcf   :  { %v72_v29 = vpop.f32.mrf.mxu0  ;;  %881 = vmatpush3.bf16.xpose.msra.mxu1 %v183_v26  ;;  %v174_v33 = vpack.c.bf16 %v172_v27, %v172_v27  ;;  %v451_v25 = vpack.c.bf16 %v809_v23, %v808_v22  ;;  %v815_v26 = vld [vmem:[%s1229_s3 + $0x50] sm:$0xff]  ;;  %v816_v27 = vld [vmem:[%s1229_s3 + $0x58] sm:$0xff] }
  0xd0   :  { %v177_v30 = vpack.c.bf16 %v72_v29, %v72_v29  ;;  %v120_v31 = vpop.f32.mrf.mxu1  ;;  %892 = vmatprep.subr.bf16.mxu1 %v1018_v3  ;;  %v500_v28 = vpack.c.bf16 %v816_v27, %v815_v26  ;;  %v813_v29 = vld [vmem:[%s1229_s3 + $0x40] sm:$0xff] }
  0xd1   :  { %v863_v32 = vpop.f32.mrf.mxu0  ;;  %v173_v36 = vmul.f32 0.25, %v120_v31 }
  0xd2   :  { %v229_v34 = vsel %vm178_vm2, %v177_v30, 0  ;;  %v871_v35 = vpop.f32.mrf.mxu1  ;;  %v814_v30 = vld [vmem:[%s1229_s3 + $0x48] sm:$0xff]  ;;  %s1020_s3 = smov [#allocation2]  }
  0xd3   :  { %887 = vmatpush3.bf16.xpose.msra.mxu0 %v229_v34  ;;  %v175_v37 = vpack.c.bf16 %v173_v36, %v173_v36  ;;  %v165_v38 = vpop.f32.mrf.mxu0  ;;  %v499_v31 = vpack.c.bf16 %v814_v30, %v813_v29  ;;  %s765_s2 = sshll.u32 %s1020_s3, 4  ;;  %s766_s2 = int_to_ptr.vmem [resolvable:$true] %s765_s2 }
  0xd4   :  { %898 = vmatprep.subr.bf16.mxu0 %v1018_v3  ;;  %v296_v39 = vpack.c.bf16 %v165_v38, %v165_v38  ;;  %s974_s20 = scalar_lea.vmem %s766_s2, 256  ;;  %p979_p1 = scmp.lt.s32.totalorder %s766_s2, %s766_s2 }
  0xd5   :  { %v878_v40 = vpop.f32.mrf.mxu0  ;;  %p975_p0 = scmp.ne.s32.totalorder %s766_s2, %s974_s20  ;;  %p980_p2 = scmp.lt.s32.totalorder %s974_s20, %s974_s20 }
  0xd6   :  { %883 = vmatmul.mubr.msk.bf16.vlgmr.msra.gmra.mxu1 %vm178_vm2, %v174_v33  ;;  %v303_v41 = vsel %vm301_vm3, %v296_v39, 0 }
  0xd7   :  { %894 = vmatprep.mubr.msk.bf16.mxu1 %vm1019_vm0, %v1018_v3  ;;  %v168_v42 = vpop.f32.mrf.mxu0  ;;  %893 = vmatpush3.bf16.msra.mxu1 %v303_v41  ;;  %p981_p3 = por %p980_p2, %p979_p1 }
  0xd8   :  { %v297_v43 = vpack.c.bf16 %v168_v42, %v168_v42  ;;  %904 = vmatprep.subr.bf16.mxu1 %v1018_v3 }
  0xd9   :  { %v879_v44 = vpop.f32.mrf.mxu0  ;;  %p982_p4 = pnand %p981_p3, %p975_p0 }
  0xda   :  { %889 = vmatmul.mubr.msk.bf16.vlgmr.msra.gmra.mxu0 %vm178_vm2, %v175_v37  ;;  %v349_v45 = vsel %vm301_vm3, %v297_v43, 0 }
  0xdb   :  { %900 = vmatprep.mubr.msk.bf16.mxu0 %vm1019_vm0, %v1018_v3  ;;  %899 = vmatpush3.bf16.msra.mxu0 %v349_v45 }
  0xdc   :  { %912 = vmatprep.subr.bf16.mxu0 %v1018_v3 }
 0x196   :  { %v219_v46 = vpop.f32.mrf.mxu1 }
 0x197   :  { %v272_v47 = vsel %vm271_vm4, %v219_v46, -inf }
 0x198   :  { %273 = vmax.xlane.f32.xlu0 %v272_v47  ;;  %v884_v48 = vpop.f32.mrf.mxu1 }
 0x19a   :  { %v222_v49 = vpop.f32.mrf.mxu1  ;;  %v265_v50 = vpop.f32.mrf.mxu0 }
 0x19b   :  { %v275_v51 = vsel %vm271_vm4, %v265_v50, -inf }
 0x19c   :  { %v885_v52 = vpop.f32.mrf.mxu1  ;;  %276 = vmax.xlane.f32.xlu0 %v275_v51  ;;  %v890_v53 = vpop.f32.mrf.mxu0 }
 0x19e   :  { %v268_v54 = vpop.f32.mrf.mxu0 }
 0x1a0   :  { %v891_v55 = vpop.f32.mrf.mxu0 }
 0x221   :  { %v274_v56 = vpop.xlane.xlu0 %273 }
 0x222   :  { %v278_v57 = vsub.f32 %v219_v46, %v274_v56 }
 0x224   :  { %v280_v58 = vmul.f32 1.442695, %v278_v57 }
 0x225   :  { %v277_v59 = vpop.xlane.xlu0 %276 }
 0x226   :  { %958 = vpow2.f32 %v280_v58  ;;  %v279_v60 = vsub.f32 %v265_v50, %v277_v59 }
 0x228   :  { %v282_v61 = vmul.f32 1.442695, %v279_v60 }
 0x22a   :  { %960 = vpow2.f32 %v282_v61 }
 0x233   :  { %v959_v62 = vpop.eup %958 }
 0x234   :  { %v284_v63 = vsel %vm271_vm4, %v959_v62, 0.0 }
 0x235   :  { %285 = vadd.xlane.f32.xlu1 %v284_v63 }
 0x237   :  { %v961_v0 = vpop.eup %960 }
 0x238   :  { %v287_v1 = vsel %vm271_vm4, %v961_v0, 0.0 }
 0x239   :  { %288 = vadd.xlane.f32.xlu1 %v287_v1 }
 0x2be   :  { %v286_v2 = vpop.xlane.xlu1 %285 }
 0x2bf   :  { %962 = vrcp.f32 %v286_v2 }
 0x2c2   :  { %v289_v4 = vpop.xlane.xlu1 %288 }
 0x2c3   :  { %964 = vrcp.f32 %v289_v4 }
 0x2cc   :  { %v963_v7 = vpop.eup %962 }
 0x2cd   :  { %v292_v8 = vmul.f32 %v963_v7, %v959_v62 }
 0x2cf   :  { %v294_v11 = vpack.c.bf16 %v292_v8, %v292_v8 }
 0x2d0   :  { %v965_v15 = vpop.eup %964 }
 0x2d1   :  { %895 = vmatmul.mubr.msk.bf16.vlgmr.msra.gmra.mxu1 %vm271_vm4, %v294_v11  ;;  %v293_v16 = vmul.f32 %v965_v15, %v961_v0 }
 0x2d2   :  { %905 = vmatpush3.bf16.msra.mxu1 %v401_v9  ;;  %908 = vmatprep.mubr.msk.bf16.mxu1 %vm1019_vm0, %v1018_v3 }
 0x2d3   :  { %v295_v21 = vpack.c.bf16 %v293_v16, %v293_v16  ;;  %906 = vmatprep.subr.bf16.mxu1 %v1018_v3 }
 0x2d5   :  { %901 = vmatmul.mubr.msk.bf16.vlgmr.msra.gmra.mxu0 %vm271_vm4, %v295_v21 }
 0x2d6   :  { %907 = vmatpush3.bf16.msra.mxu1 %v400_v17  ;;  %913 = vmatpush3.bf16.msra.mxu0 %v452_v18 }
 0x2d7   :  { %914 = vmatprep.subr.bf16.mxu0 %v1018_v3  ;;  %916 = vmatprep.mubr.msk.bf16.mxu0 %vm1019_vm0, %v1018_v3 }
 0x2d8   :  { %920 = vmatprep.subr.bf16.mxu1 %v1018_v3 }
 0x2d9   :  { %909 = vmatmul.mubr.msk.bf16.vlgmr.msra.gmra.mxu1 %vm31_vm1, %v395_v24 }
 0x2da   :  { %915 = vmatpush3.bf16.msra.mxu0 %v451_v25  ;;  %924 = vmatprep.mubr.msk.bf16.mxu1 %vm1019_vm0, %v1018_v3 }
 0x2db   :  { %928 = vmatprep.subr.bf16.mxu0 %v1018_v3  ;;  %921 = vmatpush3.bf16.msra.mxu1 %v500_v28 }
 0x2dc   :  { %922 = vmatprep.subr.bf16.mxu1 %v1018_v3 }
 0x2dd   :  { %917 = vmatmul.mubr.msk.bf16.vlgmr.msra.gmra.mxu0 %vm31_vm1, %v395_v24 }
 0x2de   :  { %930 = vmatprep.mubr.msk.bf16.mxu0 %vm1019_vm0, %v1018_v3 }
 0x2df   :  { %923 = vmatpush3.bf16.msra.mxu1 %v499_v31 }
 0x2e0   :  { %934 = vmatprep.subr.bf16.mxu1 %v1018_v3 }
 0x2e2   :  { %925 = vmatmul.mubr.msk.bf16.vlgmr.msra.gmra.mxu1 %vm31_vm1, %v395_v24 }
 0x2e3   :  { %936 = vmatprep.mubr.msk.bf16.mxu1 %vm1019_vm0, %v1018_v3 }
 0x391   :  { %v339_v32 = vpop.f32.mrf.mxu1 }
 0x392   :  { %391 = vst.msk [vmem:[#allocation2] sm:$0xff] %vm178_vm2, %v339_v32 }
 0x393   :  { %v896_v33 = vpop.f32.mrf.mxu1 }
 0x395   :  { %v342_v34 = vpop.f32.mrf.mxu1  ;;  %v385_v35 = vpop.f32.mrf.mxu0 }
 0x396   :  { %392 = vst.msk [vmem:[#allocation2 + $0x8] sm:$0xff] %vm178_vm2, %v385_v35 }
 0x397   :  { %v897_v36 = vpop.f32.mrf.mxu1  ;;  %v902_v37 = vpop.f32.mrf.mxu0 }
 0x399   :  { %v388_v38 = vpop.f32.mrf.mxu0  ;;  %v439_v39 = vpop.f32.mrf.mxu1 }
 0x39a   :  { %v546_v40 = vpack.c.bf16 %v439_v39, %v439_v39 }
 0x39b   :  { %v903_v41 = vpop.f32.mrf.mxu0  ;;  %v910_v42 = vpop.f32.mrf.mxu1 }
 0x39c   :  { %v552_v43 = vsel %vm178_vm2, %v546_v40, 0 }
 0x39d   :  { %v442_v44 = vpop.f32.mrf.mxu1  ;;  %v487_v45 = vpop.f32.mrf.mxu0  ;;  %929 = vmatpush3.bf16.xpose.msra.mxu0 %v552_v43 }
 0x39e   :  { %v547_v46 = vpack.c.bf16 %v442_v44, %v442_v44  ;;  %v542_v47 = vmul.f32 0.25, %v487_v45  ;;  %940 = vmatprep.subr.bf16.mxu0 %v1018_v3 }
 0x39f   :  { %v911_v48 = vpop.f32.mrf.mxu1  ;;  %v918_v49 = vpop.f32.mrf.mxu0 }
 0x3a0   :  { %v598_v50 = vsel %vm178_vm2, %v547_v46, 0  ;;  %v544_v51 = vpack.c.bf16 %v542_v47, %v542_v47 }
 0x3a1   :  { %v490_v52 = vpop.f32.mrf.mxu0  ;;  %935 = vmatpush3.bf16.xpose.msra.mxu1 %v598_v50 }
 0x3a2   :  { %v543_v53 = vmul.f32 0.25, %v490_v52  ;;  %946 = vmatprep.subr.bf16.mxu1 %v1018_v3  ;;  %v535_v56 = vpop.f32.mrf.mxu1 }
 0x3a3   :  { %v919_v54 = vpop.f32.mrf.mxu0  ;;  %v664_v57 = vpack.c.bf16 %v535_v56, %v535_v56 }
 0x3a4   :  { %931 = vmatmul.mubr.msk.bf16.vlgmr.msra.gmra.mxu0 %vm178_vm2, %v544_v51  ;;  %v545_v55 = vpack.c.bf16 %v543_v53, %v543_v53  ;;  %v926_v58 = vpop.f32.mrf.mxu1 }
 0x3a5   :  { %942 = vmatprep.mubr.msk.bf16.mxu0 %vm1019_vm0, %v1018_v3  ;;  %v670_v59 = vsel %vm301_vm3, %v664_v57, 0 }
 0x3a6   :  { %v538_v60 = vpop.f32.mrf.mxu1  ;;  %941 = vmatpush3.bf16.msra.mxu0 %v670_v59 }
 0x3a7   :  { %v665_v61 = vpack.c.bf16 %v538_v60, %v538_v60 }
 0x3a8   :  { %937 = vmatmul.mubr.msk.bf16.vlgmr.msra.gmra.mxu1 %vm178_vm2, %v545_v55  ;;  %v927_v62 = vpop.f32.mrf.mxu1 }
 0x3a9   :  { %948 = vmatprep.mubr.msk.bf16.mxu1 %vm1019_vm0, %v1018_v3  ;;  %v716_v63 = vsel %vm301_vm3, %v665_v61, 0 }
 0x3aa   :  { %947 = vmatpush3.bf16.msra.mxu1 %v716_v63 }
 0x464   :  { %v588_v0 = vpop.f32.mrf.mxu0 }
 0x465   :  { %v640_v1 = vsel %vm271_vm4, %v588_v0, -inf }
 0x466   :  { %641 = vmax.xlane.f32.xlu0 %v640_v1  ;;  %v932_v2 = vpop.f32.mrf.mxu0 }
 0x468   :  { %v591_v4 = vpop.f32.mrf.mxu0  ;;  %v634_v5 = vpop.f32.mrf.mxu1 }
 0x469   :  { %v643_v3 = vsel %vm271_vm4, %v634_v5, -inf }
 0x46a   :  { %644 = vmax.xlane.f32.xlu1 %v643_v3  ;;  %v933_v6 = vpop.f32.mrf.mxu0  ;;  %v938_v7 = vpop.f32.mrf.mxu1 }
 0x46c   :  { %v637_v8 = vpop.f32.mrf.mxu1 }
 0x46e   :  { %v939_v9 = vpop.f32.mrf.mxu1 }
 0x4ef   :  { %v642_v10 = vpop.xlane.xlu0 %641 }
 0x4f0   :  { %v646_v11 = vsub.f32 %v588_v0, %v642_v10 }
 0x4f2   :  { %v648_v12 = vmul.f32 1.442695, %v646_v11 }
 0x4f3   :  { %v645_v13 = vpop.xlane.xlu1 %644 }
 0x4f4   :  { %966 = vpow2.f32 %v648_v12  ;;  %v647_v14 = vsub.f32 %v634_v5, %v645_v13 }
 0x4f6   :  { %v650_v15 = vmul.f32 1.442695, %v647_v14 }
 0x4f8   :  { %968 = vpow2.f32 %v650_v15 }
 0x501   :  { %v967_v16 = vpop.eup %966 }
 0x502   :  { %v652_v17 = vsel %vm271_vm4, %v967_v16, 0.0 }
 0x503   :  { %653 = vadd.xlane.f32.xlu0 %v652_v17 }
 0x505   :  { %v969_v18 = vpop.eup %968 }
 0x506   :  { %v655_v19 = vsel %vm271_vm4, %v969_v18, 0.0 }
 0x507   :  { %656 = vadd.xlane.f32.xlu1 %v655_v19 }
 0x58c   :  { %v654_v20 = vpop.xlane.xlu0 %653 }
 0x58d   :  { %970 = vrcp.f32 %v654_v20 }
 0x590   :  { %v657_v21 = vpop.xlane.xlu1 %656 }
 0x591   :  { %972 = vrcp.f32 %v657_v21 }
 0x59a   :  { %v971_v22 = vpop.eup %970 }
 0x59b   :  { %v660_v23 = vmul.f32 %v971_v22, %v967_v16 }
 0x59d   :  { %v662_v24 = vpack.c.bf16 %v660_v23, %v660_v23 }
 0x59e   :  { %v973_v25 = vpop.eup %972 }
 0x59f   :  { %943 = vmatmul.mubr.msk.bf16.vlgmr.msra.gmra.mxu0 %vm271_vm4, %v662_v24  ;;  %v661_v26 = vmul.f32 %v973_v25, %v969_v18 }
 0x5a1   :  { %v663_v27 = vpack.c.bf16 %v661_v26, %v661_v26 }
 0x5a3   :  { %949 = vmatmul.mubr.msk.bf16.vlgmr.msra.gmra.mxu1 %vm271_vm4, %v663_v27 }
 0x5a4   :  { %985 = shalt.err (!%p982_p4)
}
 0x5a5   :  { %s1021_s21 = smov 128   ;;  %s1022_s22 = smov 8  }
 0x5a6   :  { %771 = dma.vmem_to_hbm [thread:$0]  %s766_s2, 256, %s1230_s4, [#allocation3], %s1021_s21, %s1021_s21, %s1022_s22  }
 0x5a7   :  { %s1023_s25 = smov [#allocation4]  }
 0x5a8   :  { %s777_s26 = sshll.u32 %s1023_s25, 4  ;;  %s778_s26 = int_to_ptr.vmem [resolvable:$true] %s777_s26 }
 0x5a9   :  { %s994_s27 = scalar_lea.vmem %s778_s26, 256  ;;  %p999_p6 = scmp.lt.s32.totalorder %s778_s26, %s778_s26 }
 0x5aa   :  { %p995_p5 = scmp.ne.s32.totalorder %s778_s26, %s994_s27  ;;  %p1000_p7 = scmp.lt.s32.totalorder %s994_s27, %s994_s27 }
 0x5ac   :  { %p1001_p8 = por %p1000_p7, %p999_p6 }
 0x5ae   :  { %p1002_p9 = pnand %p1001_p8, %p995_p5 }
 0x65f   :  { %v706_v28 = vpop.f32.mrf.mxu0 }
 0x660   :  { %758 = vst.msk [vmem:[#allocation4] sm:$0xff] %vm178_vm2, %v706_v28 }
 0x661   :  { %v944_v29 = vpop.f32.mrf.mxu0 }
 0x663   :  { %v709_v30 = vpop.f32.mrf.mxu0  ;;  %v752_v31 = vpop.f32.mrf.mxu1 }
 0x664   :  { %759 = vst.msk [vmem:[#allocation4 + $0x8] sm:$0xff] %vm178_vm2, %v752_v31 }
 0x665   :  { %v945_v32 = vpop.f32.mrf.mxu0  ;;  %v950_v33 = vpop.f32.mrf.mxu1 }
 0x666   :  { %1005 = shalt.err (!%p1002_p9)
}
 0x667   :  { %783 = dma.vmem_to_hbm [thread:$0]  %s778_s26, 256, %s1231_s5, [#allocation5], %s1021_s21, %s1021_s21, %s1022_s22   ;;  %v755_v34 = vpop.f32.mrf.mxu1 }
 0x669   :  { %v951_v35 = vpop.f32.mrf.mxu1 }
 0x66a   :  { %1014 = dma.done.wait [#allocation3], 256  }
 0x66b   :  { %1015 = vsyncadd [#allocation3], 4294967040 }
 0x66c   :  { %1016 = dma.done.wait [#allocation5], 256  }
 0x66d   :  { %1017 = vsyncadd [#allocation5], 4294967040 }
 0x66e   :  { %790 = vsyncpa [#allocation3], 1 }
 0x66f   :  { %791 = vsyncpa [#allocation5], 1 }

</bundles_post_ra>
